<compile_context>
chip_gen: v6e
topology: v6e:2x2x1
jax: 0.10.0
libtpu: 0.0.40
codegen_flags: <defaults>
</compile_context>

<pallas_src>
import jax
import jax.numpy as jnp
from jax.experimental import pallas as pl
from jax.experimental.pallas import tpu as pltpu

LANE = 128
_MIB = 1024 * 1024


def _round_up(n, m):
    return ((n + m - 1) // m) * m


def _detect_tpu():
    """Return (is_v7x, tensorcores_per_chip) from the device kind string."""
    kind = ""
    try:
        kind = jax.devices()[0].device_kind.lower()
    except Exception:  # no devices visible at trace time
        pass
    if "v7" in kind or "7x" in kind:
        return True, 2            # v7x: 64 MiB VMEM per TC, 2 TCs/chip
    return False, 1               # v5e / v6e: 128 MiB VMEM, 1 TC


# --------------------------------------------------------------------------
# Kernels
# --------------------------------------------------------------------------
def _trunk_kernel_fused(x_ref, w1_ref, b1_ref, w2_ref, b2_ref, o_ref):
    # h1 = relu(x @ W1 + b1); out = relu(h1 @ W2 + b2).  Dropout == identity (eval).
    x = x_ref[...].astype(w1_ref.dtype)           # in-kernel cast (no HBM pre-pass)
    h1 = jnp.dot(x, w1_ref[...], preferred_element_type=jnp.float32)
    h1 = jnp.maximum(h1 + b1_ref[...], 0.0)       # bias + ReLU stay f32 (v5e VPU)
    h1 = h1.astype(w2_ref.dtype)
    h2 = jnp.dot(h1, w2_ref[...], preferred_element_type=jnp.float32)
    h2 = jnp.maximum(h2 + b2_ref[...], 0.0)
    o_ref[...] = h2.astype(o_ref.dtype)


def _trunk_kernel_ntiled(x_ref, w1_ref, b1_ref, w2_ref, b2_ref, o_ref, h1_ref):
    # Grid = (batch tiles i, d2 panels j).  W2 is column-paneled; h1 is computed
    # once per batch tile (j == 0) and cached in VMEM scratch for the other j.
    @pl.when(pl.program_id(1) == 0)
    def _():
        x = x_ref[...].astype(w1_ref.dtype)
        h1 = jnp.dot(x, w1_ref[...], preferred_element_type=jnp.float32)
        h1 = jnp.maximum(h1 + b1_ref[...], 0.0)
        h1_ref[...] = h1.astype(h1_ref.dtype)
    h2 = jnp.dot(h1_ref[...], w2_ref[...], preferred_element_type=jnp.float32)
    h2 = jnp.maximum(h2 + b2_ref[...], 0.0)
    o_ref[...] = h2.astype(o_ref.dtype)


# --------------------------------------------------------------------------
# Parameter preparation (done ONCE, outside the per-call path)
# --------------------------------------------------------------------------
def prepare_trunk_params(w1, b1, w2, b2, *, compute_dtype=jnp.bfloat16):
    """Pad d1/d2 to lane multiples of 128 and cast weights to the MXU compute
    dtype once.  w1: [input_dim, d1], w2: [d1, d2] (i.e. torch weight.T).
    Zero padding is exact: padded cols/rows are 0, padded bias is 0, relu(0)=0."""
    input_dim, d1 = w1.shape
    d1_w2, d2 = w2.shape
    assert d1_w2 == d1 and b1.shape == (d1,) and b2.shape == (d2,)
    d1_p = _round_up(d1, LANE)
    d2_p = _round_up(d2, LANE)
    w1_p = jnp.pad(w1, ((0, 0), (0, d1_p - d1))).astype(compute_dtype)
    w2_p = jnp.pad(w2, ((0, d1_p - d1), (0, d2_p - d2))).astype(compute_dtype)
    b1_p = jnp.pad(b1, (0, d1_p - d1)).reshape(1, d1_p).astype(jnp.float32)
    b2_p = jnp.pad(b2, (0, d2_p - d2)).reshape(1, d2_p).astype(jnp.float32)
    return {"w1": w1_p, "b1": b1_p, "w2": w2_p, "b2": b2_p,
            "input_dim": input_dim, "d1": d1, "d2": d2,
            "d1_p": d1_p, "d2_p": d2_p}


# --------------------------------------------------------------------------
# Forward
# --------------------------------------------------------------------------
def shared_trunk_forward(x, params, *, out_dtype=None):
    """Fused Linear->ReLU->(Dropout: eval identity)->Linear->ReLU->(Dropout).
    x: [..., input_dim] in its native dtype.  out_dtype defaults to x.dtype
    (set bf16 to halve output writeback if downstream tolerates it)."""
    input_dim = params["input_dim"]
    d2, d1_p, d2_p = params["d2"], params["d1_p"], params["d2_p"]
    w1_p, b1_p, w2_p, b2_p = params["w1"], params["b1"], params["w2"], params["b2"]
    w_itemsize = jnp.dtype(w1_p.dtype).itemsize
    x_itemsize = jnp.dtype(x.dtype).itemsize
    out_dtype = x.dtype if out_dtype is None else out_dtype
    out_itemsize = jnp.dtype(out_dtype).itemsize

    assert x.shape[-1] == input_dim
    lead_shape = x.shape[:-1]
    x2 = x.reshape(-1, input_dim)          # leading-dim flatten only (no copy)
    B = x2.shape[0]

    is_v7x, n_tc = _detect_tpu()
    vmem_cap = (56 * _MIB) if is_v7x else (100 * _MIB)   # scoped VMEM ceiling
    h1_cap = (2 * _MIB) if is_v7x else (4 * _MIB)        # live f32 h1 per step

    # ---- batch (M) tile ---------------------------------------------------
    tm = 512 if (not is_v7x and d1_p <= 1024) else 256
    while tm > 8 and tm * d1_p * 4 > h1_cap:
        tm = max(_round_up(tm // 2, 8), 8)
    tm = min(tm, max(_round_up(B, 8), 8))
    if n_tc == 2:
        # v7x only: prefer an even number of batch tiles so both TCs stay busy.
        while tm > 8 and pl.cdiv(B, tm) % 2 == 1:
            tm = max(_round_up(tm // 2, 8), 8)
    elif tm >= B:
        tm = B          # single full-batch tile (full-dim block is always legal)
    m_tiles = pl.cdiv(B, tm)               # partial last tile handled by Pallas

    # ---- W2 column (N) tiling: bound resident-weight VMEM -----------------
    resident = (input_dim * d1_p + d1_p * d2_p) * w_itemsize
    weight_budget = (24 * _MIB) if is_v7x else (48 * _MIB)
    single_buffer = resident > 8 * _MIB and hasattr(pl, "Buffered")
    wmode = {"pipeline_mode": pl.Buffered(1)} if single_buffer else {}

    if resident <= weight_budget:
        tn = d2_p
    else:
        avail = weight_budget - input_dim * d1_p * w_itemsize
        tn = (max(avail, 0) // (2 * d1_p * w_itemsize)) // LANE * LANE
        tn = int(min(max(tn, LANE), d2_p))
    n_tiles = pl.cdiv(d2_p, tn)

    # ---- cost / vmem hints -------------------------------------------------
    flops = 2 * B * (input_dim * d1_p + d1_p * d2_p)
    bytes_accessed = (B * input_dim * x_itemsize
                      + (input_dim * d1_p + d1_p * d2_p) * w_itemsize
                      + (d1_p + d2_p) * 4
                      + B * d2_p * out_itemsize)
    cost = pl.CostEstimate(flops=int(flops), transcendentals=0,
                           bytes_accessed=int(bytes_accessed))

    w1_bufs = 1 if single_buffer else 2
    vmem_bytes = (2 * tm * input_dim * x_itemsize          # x tile (double buffered)
                  + 2 * tm * tn * out_itemsize             # out tile (double buffered)
                  + w1_bufs * input_dim * d1_p * w_itemsize  # W1 (resident)
                  + (w1_bufs if n_tiles == 1 else 2) * d1_p * tn * w_itemsize  # W2 panel
                  + 2 * (d1_p + d2_p) * 4                  # biases
                  + tm * d1_p * (4 + w_itemsize)           # f32 h1 + bf16 h1 copy/scratch
                  + tm * tn * 4)                           # f32 h2
    vmem_limit = int(min(max(int(1.25 * vmem_bytes), 32 * _MIB), vmem_cap))

    if n_tiles == 1:
        grid_spec = pltpu.PrefetchScalarGridSpec(
            num_scalar_prefetch=0,
            grid=(m_tiles,),
            in_specs=[
                pl.BlockSpec((tm, input_dim), lambda i: (i, 0)),           # x tile
                pl.BlockSpec((input_dim, d1_p), lambda i: (0, 0), **wmode),  # W1
                pl.BlockSpec((1, d1_p), lambda i: (0, 0)),                 # b1
                pl.BlockSpec((d1_p, d2_p), lambda i: (0, 0), **wmode),     # W2
                pl.BlockSpec((1, d2_p), lambda i: (0, 0)),                 # b2
            ],
            out_specs=pl.BlockSpec((tm, d2_p), lambda i: (i, 0)),
        )
        kernel = _trunk_kernel_fused
        dim_sem = ("parallel",)
    else:
        grid_spec = pltpu.PrefetchScalarGridSpec(
            num_scalar_prefetch=0,
            grid=(m_tiles, n_tiles),
            in_specs=[
                pl.BlockSpec((tm, input_dim), lambda i, j: (i, 0)),
                pl.BlockSpec((input_dim, d1_p), lambda i, j: (0, 0), **wmode),
                pl.BlockSpec((1, d1_p), lambda i, j: (0, 0)),
                pl.BlockSpec((d1_p, tn), lambda i, j: (0, j)),             # W2 panel
                pl.BlockSpec((1, tn), lambda i, j: (0, j)),                # b2 panel
            ],
            out_specs=pl.BlockSpec((tm, tn), lambda i, j: (i, j)),
            scratch_shapes=[pltpu.VMEM((tm, d1_p), w1_p.dtype)],           # cached h1
        )
        kernel = _trunk_kernel_ntiled
        dim_sem = ("parallel", "arbitrary")    # j reuses the h1 scratch -> sequential

    out_p = pl.pallas_call(
        kernel,
        out_shape=jax.ShapeDtypeStruct((B, d2_p), out_dtype),
        grid_spec=grid_spec,
        compiler_params=pltpu.CompilerParams(
            dimension_semantics=dim_sem,
            vmem_limit_bytes=vmem_limit,
        ),
        cost_estimate=cost,
    )(x2, w1_p, b1_p, w2_p, b2_p)

    out = out_p if d2_p == d2 else out_p[:, :d2]   # slice only if d2 not lane-aligned
    return out.reshape(lead_shape + (d2,))


# --------------------------------------------------------------------------
# Self-test
# --------------------------------------------------------------------------
if __name__ == "__main__":
    # Small shapes with non-multiples of 128 and a non-multiple-of-8 batch to
    # exercise the unpadded-K / partial-tile / d2-padding paths.
    # (Realistic SharedTrunkNetwork: input_dim=768, d1=512, d2=256.)
    batch, input_dim, d1, d2 = 12, 64, 96, 48

    key = jax.random.PRNGKey(0)
    kx, k1w, k1b, k2w, k2b = jax.random.split(key, 5)

    x = jax.random.normal(kx, (batch, input_dim), jnp.float32)
    bound1 = 1.0 / (input_dim ** 0.5)
    w1 = jax.random.uniform(k1w, (input_dim, d1), jnp.float32, -bound1, bound1)
    b1 = jax.random.uniform(k1b, (d1,), jnp.float32, -bound1, bound1)
    bound2 = 1.0 / (d1 ** 0.5)
    w2 = jax.random.uniform(k2w, (d1, d2), jnp.float32, -bound2, bound2)
    b2 = jax.random.uniform(k2b, (d2,), jnp.float32, -bound2, bound2)

    # f32 reference matching the PyTorch eval-mode forward (dropout = identity).
    h1_ref = jnp.maximum(
        jnp.dot(x, w1, precision=jax.lax.Precision.HIGHEST) + b1, 0.0)
    ref = jnp.maximum(
        jnp.dot(h1_ref, w2, precision=jax.lax.Precision.HIGHEST) + b2, 0.0)

    # f32 kernel path (sanity check of the forward semantics).
    params_f32 = prepare_trunk_params(w1, b1, w2, b2, compute_dtype=jnp.float32)
    out_f32 = jax.block_until_ready(shared_trunk_forward(x, params_f32))
    assert out_f32.shape == (batch, d2)
    assert jnp.allclose(out_f32, ref, atol=2e-2, rtol=2e-2), \
        float(jnp.max(jnp.abs(out_f32 - ref)))

    # Default bf16-MXU path (params prepared ONCE, reused per call).
    params_bf16 = prepare_trunk_params(w1, b1, w2, b2)
    out_bf16 = jax.block_until_ready(shared_trunk_forward(x, params_bf16))
    assert out_bf16.shape == (batch, d2)
    assert jnp.allclose(out_bf16, ref, atol=3e-2, rtol=3e-2), \
        float(jnp.max(jnp.abs(out_bf16 - ref)))

    print("KERNEL_OK")
</pallas_src>

<mosaic_0001>
module attributes {stable_mosaic.version = 11 : i64} {
  func.func @_trunk_kernel_fused(%arg0: i32, %arg1: memref<12x64xf32, #tpu.memory_space<vmem>>, %arg2: memref<64x128xf32, #tpu.memory_space<vmem>>, %arg3: memref<1x128xf32, #tpu.memory_space<vmem>>, %arg4: memref<128x128xf32, #tpu.memory_space<vmem>>, %arg5: memref<1x128xf32, #tpu.memory_space<vmem>>, %arg6: memref<12x128xf32, #tpu.memory_space<vmem>>) attributes {dimension_semantics = [#tpu.dimension_semantics<parallel>], iteration_bounds = array<i64: 1>, scalar_prefetch = 0 : i64, scratch_operands = 0 : i64, tpu.core_type = #tpu.core_type<tc>, window_params = [{transform_indices = @transform_0, window_bounds = array<i64: 12, 64>}, {pipeline_mode = #tpu.pipeline_mode<synchronous>, transform_indices = @transform_1, window_bounds = array<i64: 64, 128>}, {pipeline_mode = #tpu.pipeline_mode<synchronous>, transform_indices = @transform_2, window_bounds = array<i64: 1, 128>}, {pipeline_mode = #tpu.pipeline_mode<synchronous>, transform_indices = @transform_3, window_bounds = array<i64: 128, 128>}, {pipeline_mode = #tpu.pipeline_mode<synchronous>, transform_indices = @transform_4, window_bounds = array<i64: 1, 128>}, {transform_indices = @transform_5, window_bounds = array<i64: 12, 128>}]} {
    %c0 = arith.constant 0 : index
    %c0_0 = arith.constant 0 : index
    %0 = vector.load %arg1[%c0, %c0_0] : memref<12x64xf32, #tpu.memory_space<vmem>>, vector<12x64xf32>
    %c0_1 = arith.constant 0 : index
    %c0_2 = arith.constant 0 : index
    %1 = vector.load %arg2[%c0_1, %c0_2] : memref<64x128xf32, #tpu.memory_space<vmem>>, vector<64x128xf32>
    %cst = arith.constant dense<0.000000e+00> : vector<12x128xf32>
    %2 = tpu.matmul %0, %1, %cst {dimension_numbers = #tpu.dot_dimension_numbers<[1], [0], [0], [1], [0, 0, 1, 1], [], []>} : vector<12x64xf32>, vector<64x128xf32>, vector<12x128xf32> -> vector<12x128xf32>
    %c0_3 = arith.constant 0 : index
    %c0_4 = arith.constant 0 : index
    %3 = vector.load %arg3[%c0_3, %c0_4] : memref<1x128xf32, #tpu.memory_space<vmem>>, vector<1x128xf32>
    %4 = vector.broadcast %3 : vector<1x128xf32> to vector<12x128xf32>
    %5 = arith.addf %2, %4 : vector<12x128xf32>
    %cst_5 = arith.constant 0.000000e+00 : f32
    %6 = vector.broadcast %cst_5 : f32 to vector<12x128xf32>
    %7 = arith.maximumf %5, %6 : vector<12x128xf32>
    %c0_6 = arith.constant 0 : index
    %c0_7 = arith.constant 0 : index
    %8 = vector.load %arg4[%c0_6, %c0_7] : memref<128x128xf32, #tpu.memory_space<vmem>>, vector<128x128xf32>
    %cst_8 = arith.constant dense<0.000000e+00> : vector<12x128xf32>
    %9 = tpu.matmul %7, %8, %cst_8 {dimension_numbers = #tpu.dot_dimension_numbers<[1], [0], [0], [1], [0, 0, 1, 1], [], []>} : vector<12x128xf32>, vector<128x128xf32>, vector<12x128xf32> -> vector<12x128xf32>
    %c0_9 = arith.constant 0 : index
    %c0_10 = arith.constant 0 : index
    %10 = vector.load %arg5[%c0_9, %c0_10] : memref<1x128xf32, #tpu.memory_space<vmem>>, vector<1x128xf32>
    %11 = vector.broadcast %10 : vector<1x128xf32> to vector<12x128xf32>
    %12 = arith.addf %9, %11 : vector<12x128xf32>
    %cst_11 = arith.constant 0.000000e+00 : f32
    %13 = vector.broadcast %cst_11 : f32 to vector<12x128xf32>
    %14 = arith.maximumf %12, %13 : vector<12x128xf32>
    %c0_12 = arith.constant 0 : index
    %c0_13 = arith.constant 0 : index
    %15 = vector.load %arg6[%c0_12, %c0_13] : memref<12x128xf32, #tpu.memory_space<vmem>>, vector<12x128xf32>
    tpu.vector_store %arg6[%c0_12, %c0_13], %14 {strides = array<i32>} : memref<12x128xf32, #tpu.memory_space<vmem>>, vector<12x128xf32>,
    return
  }
  func.func @transform_0(%arg0: i32) -> (i32, i32) {
    %c0_i32 = arith.constant 0 : i32
    %c0_i32_0 = arith.constant 0 : i32
    return %arg0, %c0_i32 : i32, i32
  }
  func.func @transform_1(%arg0: i32) -> (i32, i32) {
    %c0_i32 = arith.constant 0 : i32
    %c0_i32_0 = arith.constant 0 : i32
    %c0_i32_1 = arith.constant 0 : i32
    return %c0_i32, %c0_i32_0 : i32, i32
  }
  func.func @transform_2(%arg0: i32) -> (i32, i32) {
    %c0_i32 = arith.constant 0 : i32
    %c0_i32_0 = arith.constant 0 : i32
    %c0_i32_1 = arith.constant 0 : i32
    return %c0_i32, %c0_i32_0 : i32, i32
  }
  func.func @transform_3(%arg0: i32) -> (i32, i32) {
    %c0_i32 = arith.constant 0 : i32
    %c0_i32_0 = arith.constant 0 : i32
    %c0_i32_1 = arith.constant 0 : i32
    return %c0_i32, %c0_i32_0 : i32, i32
  }
  func.func @transform_4(%arg0: i32) -> (i32, i32) {
    %c0_i32 = arith.constant 0 : i32
    %c0_i32_0 = arith.constant 0 : i32
    %c0_i32_1 = arith.constant 0 : i32
    return %c0_i32, %c0_i32_0 : i32, i32
  }
  func.func @transform_5(%arg0: i32) -> (i32, i32) {
    %c0_i32 = arith.constant 0 : i32
    %c0_i32_0 = arith.constant 0 : i32
    return %arg0, %c0_i32 : i32, i32
  }
}

</mosaic_0001>

<bundles_post_ra>
// kernel: tpu_custom_call.1
= control target key start
LH: loop header
LB: loop body
LE: loop exit
PB: predicated region body
PF: predicated region fallthrough
CT: control target
= control target key end

     0   :  { %10 = vsyncpa [#allocation3], 0  ;;  %s529_s0 = inlined_call_operand.hbm [shape: f32[12,64], index: 0, kind: input, shape index: {}]   ;;  %s530_s1 = inlined_call_operand.hbm [shape: f32[64,128], index: 1, kind: input, shape index: {}]   ;;  %s531_s2 = inlined_call_operand.vmem [shape: f32[1,128], index: 2, kind: input, shape index: {}]   ;;  %s532_s3 = inlined_call_operand.hbm [shape: f32[128,128], index: 3, kind: input, shape index: {}]   ;;  %s533_s4 = inlined_call_operand.vmem [shape: f32[1,128], index: 4, kind: input, shape index: {}]   ;;  %s534_s5 = inlined_call_operand.hbm [shape: f32[12,128], index: 5, kind: output, shape index: {}]  }
   0x1   :  { %11 = vsyncpa [#allocation6], 0 }
   0x2   :  { %12 = vsyncpa [#allocation4], 0  ;;  %s461_s18 = smov [#allocation5]   ;;  %s462_s20 = smov [#allocation2]  }
   0x3   :  { %s30_s19 = sshll.u32 %s461_s18, 4  ;;  %s18_s21 = sshll.u32 %s462_s20, 4  ;;  %s31_s19 = int_to_ptr.vmem [resolvable:$true] %s30_s19  ;;  %s19_s21 = int_to_ptr.vmem [resolvable:$true] %s18_s21 }
   0x4   :  { %s383_s22 = scalar_lea.vmem %s31_s19, 1024  ;;  %p388_p1 = scmp.lt.s32.totalorder %s31_s19, %s31_s19 }
   0x5   :  { %p384_p0 = scmp.ne.s32.totalorder %s31_s19, %s383_s22  ;;  %p389_p2 = scmp.lt.s32.totalorder %s383_s22, %s383_s22 }
   0x7   :  { %p390_p3 = por %p389_p2, %p388_p1 }
   0x9   :  { %p391_p4 = pnand %p390_p3, %p384_p0 }
   0xb   :  { %394 = shalt.err (!%p391_p4)
}
   0xc   :  { %s463_s23 = smov 128   ;;  %s464_s24 = smov 8  }
   0xd   :  { %36 = dma.hbm_to_vmem [thread:$0]  %s530_s1, 1024, %s31_s19, [#allocation6], %s463_s23, %s463_s23, %s464_s24  }
   0xe   :  { %s403_s27 = scalar_lea.vmem %s19_s21, 256  ;;  %p408_p6 = scmp.lt.s32.totalorder %s19_s21, %s19_s21 }
   0xf   :  { %p404_p5 = scmp.ne.s32.totalorder %s19_s21, %s403_s27  ;;  %p409_p7 = scmp.lt.s32.totalorder %s403_s27, %s403_s27 }
  0x11   :  { %p410_p8 = por %p409_p7, %p408_p6 }
  0x13   :  { %p411_p9 = pnand %p410_p8, %p404_p5 }
  0x15   :  { %414 = shalt.err (!%p411_p9)
}
  0x16   :  { %24 = dma.hbm_to_vmem [thread:$0]  %s529_s0, 256, %s19_s21, [#allocation3], %s463_s23, %s463_s23, %s464_s24  }
  0x17   :  { %s465_s30 = smov [#allocation7]  }
  0x18   :  { %s44_s6 = sshll.u32 %s465_s30, 4  ;;  %s45_s6 = int_to_ptr.vmem [resolvable:$true] %s44_s6 }
  0x19   :  { %s423_s7 = scalar_lea.vmem %s45_s6, 2048  ;;  %p428_p11 = scmp.lt.s32.totalorder %s45_s6, %s45_s6 }
  0x1a   :  { %p424_p10 = scmp.ne.s32.totalorder %s45_s6, %s423_s7  ;;  %p429_p12 = scmp.lt.s32.totalorder %s423_s7, %s423_s7 }
  0x1c   :  { %p430_p13 = por %p429_p12, %p428_p11 }
  0x1e   :  { %p431_p0 = pnand %p430_p13, %p424_p10 }
  0x20   :  { %434 = shalt.err (!%p431_p0)
}
  0x21   :  { %50 = dma.hbm_to_vmem [thread:$0]  %s532_s3, 2048, %s45_s6, [#allocation6], %s463_s23, %s463_s23, %s464_s24  }
  0x22   :  { %455 = dma.done.wait [#allocation3], 256  }
  0x23   :  { %456 = vsyncadd [#allocation3], 4294967040 }
  0x24   :  { %457 = dma.done.wait [#allocation6], 3072  }
  0x25   :  { %458 = vsyncadd [#allocation6], 4294964224  ;;  %v71_v0 = vld [vmem:[#allocation5 + $0x38] sm:$0xff]  ;;  %v70_v1 = vld [vmem:[#allocation5 + $0x30] sm:$0xff]  ;;  %vm79_vm0 = vcmask 523264   ;;  %s466_s11 = smov [#allocation8]  }
  0x26   :  { %315 = vmatprep.subr.mxu0 %v71_v0  ;;  %v69_v2 = vld [vmem:[#allocation5 + $0x28] sm:$0xff]  ;;  %v62_v3 = vld [vmem:[#allocation2] sm:$0xff]  ;;  %v178_v4 = vld [vmem:[#allocation7 + $0x78] sm:$0xff]  ;;  %s270_s12 = sshll.u32 %s466_s11, 4  ;;  %s271_s12 = int_to_ptr.vmem [resolvable:$true] %s270_s12 }
  0x27   :  { %316 = vmatpush3.msra.mxu0 %v71_v0  ;;  %331 = vmatprep.mubr.msk.f32.mxu0 %vm79_vm0, %v62_v3  ;;  %v177_v5 = vld [vmem:[#allocation7 + $0x70] sm:$0xff]  ;;  %v68_v6 = vld [vmem:[#allocation5 + $0x20] sm:$0xff]  ;;  %v176_v7 = vld [vmem:[#allocation7 + $0x68] sm:$0xff]  ;;  %p440_p2 = scmp.lt.s32.totalorder %s271_s12, %s271_s12 }
  0x28   :  { %317 = vmatprep.subr.mxu0 %v70_v1  ;;  %334 = vmatprep.subr.mxu1 %v178_v4  ;;  %v67_v8 = vld [vmem:[#allocation5 + $0x18] sm:$0xff]  ;;  %v175_v9 = vld [vmem:[#allocation7 + $0x60] sm:$0xff]  ;;  %v66_v10 = vld [vmem:[#allocation5 + $0x10] sm:$0xff] }
  0x29   :  { %318 = vmatpush3.msra.mxu0 %v70_v1  ;;  %335 = vmatpush3.msra.mxu1 %v178_v4  ;;  %v174_v11 = vld [vmem:[#allocation7 + $0x58] sm:$0xff]  ;;  %v65_v12 = vld [vmem:[#allocation5 + $0x8] sm:$0xff]  ;;  %v173_v13 = vld [vmem:[#allocation7 + $0x50] sm:$0xff] }
  0x2a   :  { %319 = vmatprep.subr.mxu0 %v69_v2  ;;  %336 = vmatprep.subr.mxu1 %v177_v5  ;;  %v64_v14 = vld [vmem:[#allocation5] sm:$0xff]  ;;  %v172_v15 = vld [vmem:[#allocation7 + $0x48] sm:$0xff]  ;;  %v63_v16 = vld [vmem:[#allocation2 + $0x8] sm:$0xf] }
  0x2b   :  { %320 = vmatpush3.msra.mxu0 %v69_v2  ;;  %337 = vmatpush3.msra.mxu1 %v177_v5  ;;  %v171_v17 = vld [vmem:[#allocation7 + $0x40] sm:$0xff]  ;;  %v170_v18 = vld [vmem:[#allocation7 + $0x38] sm:$0xff]  ;;  %v169_v19 = vld [vmem:[#allocation7 + $0x30] sm:$0xff] }
  0x2c   :  { %321 = vmatprep.subr.mxu0 %v68_v6  ;;  %338 = vmatprep.subr.mxu1 %v176_v7  ;;  %v168_v20 = vld [vmem:[#allocation7 + $0x28] sm:$0xff]  ;;  %v167_v21 = vld [vmem:[#allocation7 + $0x20] sm:$0xff]  ;;  %v166_v22 = vld [vmem:[#allocation7 + $0x18] sm:$0xff] }
  0x2d   :  { %322 = vmatpush3.msra.mxu0 %v68_v6  ;;  %339 = vmatpush3.msra.mxu1 %v176_v7  ;;  %v165_v23 = vld [vmem:[#allocation7 + $0x10] sm:$0xff]  ;;  %v164_v24 = vld [vmem:[#allocation7 + $0x8] sm:$0xff]  ;;  %v163_v25 = vld [vmem:[#allocation7] sm:$0xff] }
  0x2e   :  { %323 = vmatprep.subr.mxu0 %v67_v8  ;;  %340 = vmatprep.subr.mxu1 %v175_v9  ;;  %v283_v26 = vld [vmem:[%s531_s2] ss:$0 sm:$0xff]  ;;  %s435_s2 = scalar_lea.vmem %s271_s12, 256 }
  0x2f   :  { %324 = vmatpush3.msra.mxu0 %v67_v8  ;;  %341 = vmatpush3.msra.mxu1 %v175_v9  ;;  %v286_v33 = vld [vmem:[%s533_s4] ss:$0 sm:$0xff]  ;;  %p436_p1 = scmp.ne.s32.totalorder %s271_s12, %s435_s2  ;;  %p441_p3 = scmp.lt.s32.totalorder %s435_s2, %s435_s2 }
  0x30   :  { %325 = vmatprep.subr.mxu0 %v66_v10  ;;  %342 = vmatprep.subr.mxu1 %v174_v11 }
  0x31   :  { %326 = vmatpush3.msra.mxu0 %v66_v10  ;;  %343 = vmatpush3.msra.mxu1 %v174_v11  ;;  %p442_p4 = por %p441_p3, %p440_p2 }
  0x32   :  { %327 = vmatprep.subr.mxu0 %v65_v12  ;;  %344 = vmatprep.subr.mxu1 %v173_v13 }
  0x33   :  { %328 = vmatpush3.msra.mxu0 %v65_v12  ;;  %345 = vmatpush3.msra.mxu1 %v173_v13  ;;  %p443_p5 = pnand %p442_p4, %p436_p1 }
  0x34   :  { %329 = vmatprep.subr.mxu0 %v64_v14  ;;  %346 = vmatprep.subr.mxu1 %v172_v15 }
  0x35   :  { %330 = vmatpush3.msra.mxu0 %v64_v14  ;;  %347 = vmatpush3.msra.mxu1 %v172_v15 }
  0x36   :  { %332 = vmatmul.mubr.msk.f32.vlgmr.msra.gmra.mxu0 %vm79_vm0, %v63_v16  ;;  %348 = vmatprep.subr.mxu1 %v171_v17 }
  0x37   :  { %349 = vmatpush3.msra.mxu1 %v171_v17 }
  0x38   :  { %350 = vmatprep.subr.mxu1 %v170_v18 }
  0x39   :  { %351 = vmatpush3.msra.mxu1 %v170_v18 }
  0x3a   :  { %352 = vmatprep.subr.mxu1 %v169_v19 }
  0x3b   :  { %353 = vmatpush3.msra.mxu1 %v169_v19 }
  0x3c   :  { %354 = vmatprep.subr.mxu1 %v168_v20 }
  0x3d   :  { %355 = vmatpush3.msra.mxu1 %v168_v20 }
  0x3e   :  { %356 = vmatprep.subr.mxu1 %v167_v21 }
  0x3f   :  { %357 = vmatpush3.msra.mxu1 %v167_v21 }
  0x40   :  { %358 = vmatprep.subr.mxu1 %v166_v22 }
  0x41   :  { %359 = vmatpush3.msra.mxu1 %v166_v22 }
  0x42   :  { %360 = vmatprep.subr.mxu1 %v165_v23 }
  0x43   :  { %361 = vmatpush3.msra.mxu1 %v165_v23 }
  0x44   :  { %362 = vmatprep.subr.mxu1 %v164_v24 }
  0x45   :  { %363 = vmatpush3.msra.mxu1 %v164_v24 }
  0x46   :  { %364 = vmatprep.subr.mxu1 %v163_v25 }
  0x47   :  { %365 = vmatpush3.msra.mxu1 %v163_v25 }
  0xf6   :  { %v333_v27 = vpop.f32.mrf.mxu0 }
  0xf7   :  { %v158_v28 = vadd.f32 %v333_v27, %v283_v26 }
  0xf8   :  { %v152_v29 = vpop.f32.mrf.mxu0 }
  0xf9   :  { %v153_v30 = vadd.f32 %v283_v26, %v152_v29  ;;  %v162_v32 = vmax.f32 %v158_v28, 0.0 }
  0xfb   :  { %v161_v31 = vmax.f32 %v153_v30, 0.0 }
  0xfd   :  { %366 = vmatprep.mubr.f32.mxu1 %v161_v31 }
  0xfe   :  { %367 = vmatmul.mubr.f32.vlgmr.msra.gmra.mxu1 %v162_v32 }
 0x1be   :  { %v368_v34 = vpop.f32.mrf.mxu1 }
 0x1bf   :  { %v258_v35 = vadd.f32 %v368_v34, %v286_v33 }
 0x1c0   :  { %v252_v36 = vpop.f32.mrf.mxu1 }
 0x1c1   :  { %v262_v37 = vmax.f32 %v258_v35, 0.0  ;;  %v253_v38 = vadd.f32 %v286_v33, %v252_v36 }
 0x1c3   :  { %264 = vst [vmem:[#allocation8 + $0x8] sm:$0xf] %v262_v37  ;;  %v261_v39 = vmax.f32 %v253_v38, 0.0 }
 0x1c5   :  { %263 = vst [vmem:[#allocation8] sm:$0xff] %v261_v39 }
 0x1c6   :  { %446 = shalt.err (!%p443_p5)
}
 0x1c7   :  { %276 = dma.vmem_to_hbm [thread:$0]  %s271_s12, 256, %s534_s5, [#allocation4], %s463_s23, %s463_s23, %s464_s24  }
 0x1c8   :  { %459 = dma.done.wait [#allocation4], 256  }
 0x1c9   :  { %460 = vsyncadd [#allocation4], 4294967040 }
 0x1ca   :  { %280 = vsyncpa [#allocation3], 1 }
 0x1cb   :  { %281 = vsyncpa [#allocation6], 1 }
 0x1cc   :  { %282 = vsyncpa [#allocation4], 1 }

</bundles_post_ra>
